<compile_context>
chip_gen: v6e
topology: v6e:2x2x1
jax: 0.10.0
libtpu: 0.0.40
codegen_flags: <defaults>
</compile_context>

<pallas_src>
import functools

import jax
import jax.numpy as jnp
from jax.experimental import pallas as pl
from jax.experimental.pallas import tpu as pltpu


def asp_kernel(x_ref, w1t_ref, b1_ref, w2t_ref, b2_ref, out_ref, *, matmul_dtype):
    # x_ref block: (Bb, T, C).  Weights resident in VMEM:
    #   w1t: (C, Bn), b1: (1, Bn), w2t: (Bn, C), b2: (1, C).
    Bb, T, C = x_ref.shape

    x = x_ref[...]                                     # (Bb, T, C)
    xf = x.astype(jnp.float32)
    x2d = x.reshape(Bb * T, C)                         # fold batch*time into MXU M-dim

    # linear1 (Conv1d k=1) + tanh: (Bb*T, C) @ (C, Bn) + (1, Bn)
    h = jnp.dot(x2d.astype(matmul_dtype), w1t_ref[...].astype(matmul_dtype),
                preferred_element_type=jnp.float32)
    h = jnp.tanh(h + b1_ref[...])                      # (Bb*T, Bn), f32

    # linear2 (Conv1d k=1): (Bb*T, Bn) @ (Bn, C) + (1, C)
    logits = jnp.dot(h.astype(matmul_dtype), w2t_ref[...].astype(matmul_dtype),
                     preferred_element_type=jnp.float32)
    logits = (logits + b2_ref[...]).reshape(Bb, T, C)  # (Bb, T, C)

    # softmax over time (axis=1 here == dim=2 in PyTorch), with the 1/denom
    # normalization folded into the final statistics (alpha never materialized).
    m = jnp.max(logits, axis=1, keepdims=True)         # (Bb, 1, C)
    e = jnp.exp(logits - m)                            # (Bb, T, C)
    denom = jnp.sum(e, axis=1)                         # (Bb, C)
    num_mean = jnp.sum(e * xf, axis=1)                 # (Bb, C)
    num_ex2 = jnp.sum(e * xf * xf, axis=1)             # (Bb, C)

    inv = 1.0 / denom                                  # only (Bb, C) elements
    mean = num_mean * inv
    ex2 = num_ex2 * inv
    var = ex2 - mean * mean
    std = jnp.sqrt(jnp.maximum(var, 1e-9))

    # single lane-dense store: (Bb, 2, C)
    out_ref[...] = jnp.stack([mean, std], axis=1).astype(out_ref.dtype)


def _pick_block_b(B, T, C, itemsize, vmem_budget_bytes=8 << 20):
    """Largest divisor of B whose tile (+ intermediates) fits the budget while
    keeping >= 2 grid steps (so both v7x TensorCores get work)."""
    per_batch = 4 * T * C * itemsize                   # x + logits + exp + slack
    max_bb = max(1, vmem_budget_bytes // per_batch)
    best = 1
    for cand in range(1, B + 1):
        if B % cand != 0 or cand > max_bb:
            continue
        if B // cand >= 2 or B == 1:
            best = cand
    return best


def attentive_stats_pool(x, w1, b1, w2, b2, *, matmul_dtype=None, block_b=None):
    """x: (B, C, T).  w1: (Bn, C), b1: (Bn,), w2: (C, Bn), b2: (C,).

    Returns (B, 2*C) == torch.cat([mean, std], dim=1).
    Pass matmul_dtype=jnp.bfloat16 on v6e/v7x for MXU peak (f32 accumulation).
    """
    B, C, T = x.shape
    Bn = w1.shape[0]
    if matmul_dtype is None:
        matmul_dtype = x.dtype
    matmul_dtype = jnp.dtype(matmul_dtype)
    if block_b is None:
        block_b = _pick_block_b(B, T, C, jnp.dtype(x.dtype).itemsize)
    assert B % block_b == 0, (B, block_b)

    # Layout plumbing in the wrapper: channels on the lane axis, weights
    # pre-transposed for (M, K) @ (K, N) matmuls, biases as lane rows.
    x_t = jnp.transpose(x, (0, 2, 1))                  # (B, T, C)
    w1t = jnp.transpose(w1)                            # (C, Bn)
    w2t = jnp.transpose(w2)                            # (Bn, C)
    b1r = b1.reshape(1, Bn)
    b2r = b2.reshape(1, C)

    kernel = functools.partial(asp_kernel, matmul_dtype=matmul_dtype)

    out = pl.pallas_call(
        kernel,
        out_shape=jax.ShapeDtypeStruct((B, 2, C), jnp.float32),
        grid_spec=pltpu.PrefetchScalarGridSpec(
            num_scalar_prefetch=0,
            grid=(B // block_b,),
            in_specs=[
                pl.BlockSpec((block_b, T, C), lambda b: (b, 0, 0)),  # x tile
                pl.BlockSpec((C, Bn), lambda b: (0, 0)),             # W1^T
                pl.BlockSpec((1, Bn), lambda b: (0, 0)),             # b1 row
                pl.BlockSpec((Bn, C), lambda b: (0, 0)),             # W2^T
                pl.BlockSpec((1, C), lambda b: (0, 0)),              # b2 row
            ],
            out_specs=pl.BlockSpec((block_b, 2, C), lambda b: (b, 0, 0)),
        ),
        compiler_params=pltpu.CompilerParams(
            dimension_semantics=("parallel",),
            vmem_limit_bytes=32 * 1024 * 1024,
        ),
    )(x_t, w1t, b1r, w2t, b2r)

    return out.reshape(B, 2 * C)


def reference(x, w1, b1, w2, b2):
    # Pure-JAX reference mirroring the PyTorch forward (NCW layout).
    h = jnp.tanh(jnp.einsum("oc,bct->bot", w1, x) + b1[None, :, None])
    logits = jnp.einsum("co,bot->bct", w2, h) + b2[None, :, None]
    alpha = jax.nn.softmax(logits, axis=2)
    mean = jnp.sum(alpha * x, axis=2)
    residuals = jnp.sum(alpha * x**2, axis=2) - mean**2
    std = jnp.sqrt(jnp.clip(residuals, 1e-9, None))
    return jnp.concatenate([mean, std], axis=1)


if __name__ == "__main__":
    # Small shapes consistent with the module: in_dim=C=32, bottleneck=16, T=16, B=2
    B, C, Bn, T = 2, 32, 16, 16

    key = jax.random.PRNGKey(0)
    kx, kw1, kb1, kw2, kb2 = jax.random.split(key, 5)

    x = jax.random.normal(kx, (B, C, T), dtype=jnp.float32)

    # Conv1d kernel_size=1 -> plain (out, in) matrices + 1-D biases.
    w1 = 0.1 * jax.random.normal(kw1, (Bn, C), dtype=jnp.float32)   # linear1.weight
    b1 = 0.1 * jax.random.normal(kb1, (Bn,), dtype=jnp.float32)     # linear1.bias
    w2 = 0.1 * jax.random.normal(kw2, (C, Bn), dtype=jnp.float32)   # linear2.weight
    b2 = 0.1 * jax.random.normal(kb2, (C,), dtype=jnp.float32)      # linear2.bias

    ref = reference(x, w1, b1, w2, b2)

    # f32 path: strict correctness check.
    out = attentive_stats_pool(x, w1, b1, w2, b2)
    jax.block_until_ready(out)
    assert out.shape == (B, 2 * C), out.shape
    assert jnp.allclose(out, ref, atol=1e-5, rtol=1e-5), "f32 mismatch vs reference"

    # bf16-operand matmul path (v6e/v7x optimization): looser tolerance.
    out_bf16 = attentive_stats_pool(x, w1, b1, w2, b2, matmul_dtype=jnp.bfloat16)
    jax.block_until_ready(out_bf16)
    assert out_bf16.shape == (B, 2 * C), out_bf16.shape
    assert bool(jnp.all(jnp.isfinite(out_bf16)))
    assert jnp.allclose(out_bf16, ref, atol=5e-2, rtol=5e-2), "bf16 path diverged"

    print("KERNEL_OK")
</pallas_src>

<mosaic_0001>
module attributes {stable_mosaic.version = 11 : i64} {
  func.func @asp_kernel(%arg0: i32, %arg1: memref<1x16x32xf32, #tpu.memory_space<vmem>>, %arg2: memref<32x16xf32, #tpu.memory_space<vmem>>, %arg3: memref<1x16xf32, #tpu.memory_space<vmem>>, %arg4: memref<16x32xf32, #tpu.memory_space<vmem>>, %arg5: memref<1x32xf32, #tpu.memory_space<vmem>>, %arg6: memref<1x2x32xf32, #tpu.memory_space<vmem>>) attributes {dimension_semantics = [#tpu.dimension_semantics<parallel>], iteration_bounds = array<i64: 2>, scalar_prefetch = 0 : i64, scratch_operands = 0 : i64, tpu.core_type = #tpu.core_type<tc>, window_params = [{transform_indices = @transform_0, window_bounds = array<i64: 1, 16, 32>}, {pipeline_mode = #tpu.pipeline_mode<synchronous>, transform_indices = @transform_1, window_bounds = array<i64: 32, 16>}, {pipeline_mode = #tpu.pipeline_mode<synchronous>, transform_indices = @transform_2, window_bounds = array<i64: 1, 16>}, {pipeline_mode = #tpu.pipeline_mode<synchronous>, transform_indices = @transform_3, window_bounds = array<i64: 16, 32>}, {pipeline_mode = #tpu.pipeline_mode<synchronous>, transform_indices = @transform_4, window_bounds = array<i64: 1, 32>}, {transform_indices = @transform_5, window_bounds = array<i64: 1, 2, 32>}]} {
    %c0 = arith.constant 0 : index
    %c0_0 = arith.constant 0 : index
    %c0_1 = arith.constant 0 : index
    %0 = vector.load %arg1[%c0, %c0_0, %c0_1] : memref<1x16x32xf32, #tpu.memory_space<vmem>>, vector<1x16x32xf32>
    %1 = vector.shape_cast %0 : vector<1x16x32xf32> to vector<16x32xf32>
    %c0_2 = arith.constant 0 : index
    %c0_3 = arith.constant 0 : index
    %2 = vector.load %arg2[%c0_2, %c0_3] : memref<32x16xf32, #tpu.memory_space<vmem>>, vector<32x16xf32>
    %cst = arith.constant dense<0.000000e+00> : vector<16x16xf32>
    %3 = tpu.matmul %1, %2, %cst {dimension_numbers = #tpu.dot_dimension_numbers<[1], [0], [0], [1], [0, 0, 1, 1], [], []>} : vector<16x32xf32>, vector<32x16xf32>, vector<16x16xf32> -> vector<16x16xf32>
    %c0_4 = arith.constant 0 : index
    %c0_5 = arith.constant 0 : index
    %4 = vector.load %arg3[%c0_4, %c0_5] : memref<1x16xf32, #tpu.memory_space<vmem>>, vector<1x16xf32>
    %5 = vector.broadcast %4 : vector<1x16xf32> to vector<16x16xf32>
    %6 = arith.addf %3, %5 : vector<16x16xf32>
    %7 = math.tanh %6 : vector<16x16xf32>
    %c0_6 = arith.constant 0 : index
    %c0_7 = arith.constant 0 : index
    %8 = vector.load %arg4[%c0_6, %c0_7] : memref<16x32xf32, #tpu.memory_space<vmem>>, vector<16x32xf32>
    %cst_8 = arith.constant dense<0.000000e+00> : vector<16x32xf32>
    %9 = tpu.matmul %7, %8, %cst_8 {dimension_numbers = #tpu.dot_dimension_numbers<[1], [0], [0], [1], [0, 0, 1, 1], [], []>} : vector<16x16xf32>, vector<16x32xf32>, vector<16x32xf32> -> vector<16x32xf32>
    %c0_9 = arith.constant 0 : index
    %c0_10 = arith.constant 0 : index
    %10 = vector.load %arg5[%c0_9, %c0_10] : memref<1x32xf32, #tpu.memory_space<vmem>>, vector<1x32xf32>
    %11 = vector.broadcast %10 : vector<1x32xf32> to vector<16x32xf32>
    %12 = arith.addf %9, %11 : vector<16x32xf32>
    %13 = vector.shape_cast %12 : vector<16x32xf32> to vector<1x16x32xf32>
    %cst_11 = arith.constant dense<0xFF800000> : vector<1x32xf32>
    %14 = vector.multi_reduction <maximumf>, %13, %cst_11 [1] : vector<1x16x32xf32> to vector<1x32xf32>
    %15 = vector.shape_cast %14 : vector<1x32xf32> to vector<1x1x32xf32>
    %16 = vector.broadcast %15 : vector<1x1x32xf32> to vector<1x16x32xf32>
    %17 = arith.subf %13, %16 : vector<1x16x32xf32>
    %18 = math.exp %17 : vector<1x16x32xf32>
    %cst_12 = arith.constant dense<0.000000e+00> : vector<1x32xf32>
    %19 = vector.multi_reduction <add>, %18, %cst_12 [1] : vector<1x16x32xf32> to vector<1x32xf32>
    %20 = arith.mulf %18, %0 : vector<1x16x32xf32>
    %cst_13 = arith.constant dense<0.000000e+00> : vector<1x32xf32>
    %21 = vector.multi_reduction <add>, %20, %cst_13 [1] : vector<1x16x32xf32> to vector<1x32xf32>
    %22 = arith.mulf %18, %0 : vector<1x16x32xf32>
    %23 = arith.mulf %22, %0 : vector<1x16x32xf32>
    %cst_14 = arith.constant dense<0.000000e+00> : vector<1x32xf32>
    %24 = vector.multi_reduction <add>, %23, %cst_14 [1] : vector<1x16x32xf32> to vector<1x32xf32>
    %cst_15 = arith.constant 1.000000e+00 : f32
    %25 = vector.broadcast %cst_15 : f32 to vector<1x32xf32>
    %26 = arith.divf %25, %19 : vector<1x32xf32>
    %27 = arith.mulf %21, %26 : vector<1x32xf32>
    %28 = arith.mulf %24, %26 : vector<1x32xf32>
    %29 = arith.mulf %27, %27 : vector<1x32xf32>
    %30 = arith.subf %28, %29 : vector<1x32xf32>
    %cst_16 = arith.constant 9.99999971E-10 : f32
    %31 = vector.broadcast %cst_16 : f32 to vector<1x32xf32>
    %32 = arith.maximumf %30, %31 : vector<1x32xf32>
    %33 = math.sqrt %32 : vector<1x32xf32>
    %34 = vector.shape_cast %27 : vector<1x32xf32> to vector<1x1x32xf32>
    %35 = vector.shape_cast %33 : vector<1x32xf32> to vector<1x1x32xf32>
    %36 = tpu.concatenate %34, %35 in 1 : vector<1x1x32xf32>, vector<1x1x32xf32> -> vector<1x2x32xf32>
    %c0_17 = arith.constant 0 : index
    %c0_18 = arith.constant 0 : index
    %c0_19 = arith.constant 0 : index
    %37 = vector.load %arg6[%c0_17, %c0_18, %c0_19] : memref<1x2x32xf32, #tpu.memory_space<vmem>>, vector<1x2x32xf32>
    tpu.vector_store %arg6[%c0_17, %c0_18, %c0_19], %36 {strides = array<i32>} : memref<1x2x32xf32, #tpu.memory_space<vmem>>, vector<1x2x32xf32>,
    return
  }
  func.func @transform_0(%arg0: i32) -> (i32, i32, i32) {
    %c0_i32 = arith.constant 0 : i32
    %c0_i32_0 = arith.constant 0 : i32
    %c0_i32_1 = arith.constant 0 : i32
    return %arg0, %c0_i32, %c0_i32_0 : i32, i32, i32
  }
  func.func @transform_1(%arg0: i32) -> (i32, i32) {
    %c0_i32 = arith.constant 0 : i32
    %c0_i32_0 = arith.constant 0 : i32
    %c0_i32_1 = arith.constant 0 : i32
    return %c0_i32, %c0_i32_0 : i32, i32
  }
  func.func @transform_2(%arg0: i32) -> (i32, i32) {
    %c0_i32 = arith.constant 0 : i32
    %c0_i32_0 = arith.constant 0 : i32
    %c0_i32_1 = arith.constant 0 : i32
    return %c0_i32, %c0_i32_0 : i32, i32
  }
  func.func @transform_3(%arg0: i32) -> (i32, i32) {
    %c0_i32 = arith.constant 0 : i32
    %c0_i32_0 = arith.constant 0 : i32
    %c0_i32_1 = arith.constant 0 : i32
    return %c0_i32, %c0_i32_0 : i32, i32
  }
  func.func @transform_4(%arg0: i32) -> (i32, i32) {
    %c0_i32 = arith.constant 0 : i32
    %c0_i32_0 = arith.constant 0 : i32
    %c0_i32_1 = arith.constant 0 : i32
    return %c0_i32, %c0_i32_0 : i32, i32
  }
  func.func @transform_5(%arg0: i32) -> (i32, i32, i32) {
    %c0_i32 = arith.constant 0 : i32
    %c0_i32_0 = arith.constant 0 : i32
    %c0_i32_1 = arith.constant 0 : i32
    return %arg0, %c0_i32, %c0_i32_0 : i32, i32, i32
  }
}

</mosaic_0001>

<bundles_post_ra>
// kernel: tpu_custom_call.1
= control target key start
LH: loop header
LB: loop body
LE: loop exit
PB: predicated region body
PF: predicated region fallthrough
CT: control target
= control target key end

     0   :  { %10 = vsyncpa [#allocation3], 0  ;;  %s865_s0 = inlined_call_operand.vmem [shape: f32[2,16,32], index: 0, kind: input, shape index: {}]   ;;  %s866_s1 = inlined_call_operand.vmem [shape: f32[32,16], index: 1, kind: input, shape index: {}]   ;;  %s867_s2 = inlined_call_operand.vmem [shape: f32[1,16], index: 2, kind: input, shape index: {}]   ;;  %s868_s3 = inlined_call_operand.vmem [shape: f32[16,32], index: 3, kind: input, shape index: {}]   ;;  %s869_s4 = inlined_call_operand.vmem [shape: f32[1,32], index: 4, kind: input, shape index: {}]   ;;  %s870_s5 = inlined_call_operand.hbm [shape: f32[2,2,32], index: 5, kind: output, shape index: {}]  }
   0x1   :  { %12 = vsyncpa [#allocation3 + $0x1], 0  ;;  %s738_s18 = smov 0   ;;  %s740_s19 = smov 0  }
   0x2   :  { %s742_s20 = smov 0   ;;  %s744_s21 = smov 0  }
   0x3 LB: > { %s759_s22 = sadd.s32 4294967295, %s705_s21   ;;  %s548_s23 = sadd.s32 4294967294, %s705_s21   ;;  %s705_s21 = sphi %s744_s21, %s876_s21   ;;  %s701_s20 = sphi %s742_s20, %s875_s20   ;;  %s697_s19 = sphi %s740_s19, %s874_s19   ;;  %s693_s18 = sphi %s738_s18, %s873_s18  }
   0x4   : > { %s763_s24 = sadd.s32 1, %s705_s21   ;;  %s135_s25 = sadd.s32 1, %s701_s20 }
   0x5   : > { %s132_s26 = ssub.s32 %s705_s21, %s763_s24  ;;  %p145_p0 = scmp.ne.s32.totalorder %s701_s20, %s697_s19 }
   0x6   : > { %p133_p1 = scmp.eq.s32.totalorder %s132_s26, 0  ;;  %p146_p2 = scmp.eq.s32.totalorder %s759_s22, 1 }
   0x7   : > { %p151_p3 = scmp.ne.s32.totalorder %s697_s19, %s693_s18  ;;  %p152_p4 = scmp.eq.s32.totalorder %s548_s23, 1 }
   0x8   : > { %s774_s27 = scalar_select %p133_p1, %s701_s20, %s135_s25  }
   0x9   : > { %p776_p5 = por %p146_p2, %p145_p0  ;;  %p780_p6 = por %p152_p4, %p151_p3 }
   0xa   : > { %p551_p7 = scmp.ge.s32.totalorder %s705_s21, 1  ;;  %p190_p8 = scmp.lt.s32.totalorder %s705_s21, 3 }
   0xc   : > { %p191_p9 = pnand %p551_p7, %p190_p8 }
   0xd   : > { %p218_p10 = scmp.lt.s32.totalorder (!%p191_p9), %s759_s22, 1  ;;  %s215_s10 = sand.u32 (!%p191_p9), 1, %s697_s19  }
   0xe   : > { %194 = sbr.rel (%p191_p9) target bundleno = 540 (0x21c), region = 40  ;;  %s562_s12 = sshll.u32 (!%p191_p9), %s759_s22, 5 }
   0xf   : > { %s476_s23 = scalar_lea.sflag (!%p191_p9), [#allocation3], %s215_s10  ;;  %s707_s25 = smov (!%p191_p9), [#allocation2]  }
  0x10   : > { %s649_s26 = sshll.u32 (!%p191_p9), %s707_s25, 4  ;;  %s650_s26 = int_to_ptr.vmem [resolvable:$false] %s649_s26 }
  0x11   : > { %s651_s30 = scalar_lea.vmem (!%p191_p9), %s650_s26, 64 }
  0x13   : > { %v228_v0 = vld [vmem:[%s866_s1 + $0x18] sm:$0xff]  ;;  %v227_v1 = vld [vmem:[%s866_s1 + $0x10] sm:$0xff]  ;;  %v226_v2 = vld [vmem:[%s866_s1 + $0x8] sm:$0xff]  ;;  %s219_s11 = scalar_select %p218_p10, %s759_s22, 1  ;;  %vm236_vm0 = vcmask 261120   ;;  %vm329_vm1 = vcmask 130048  }
  0x14   : > { %576 = vmatprep.subr.mxu0 %v228_v0  ;;  %v225_v3 = vld [vmem:[%s866_s1] sm:$0xff]  ;;  %v321_v6 = vld [vmem:[%s868_s3 + $0x8] sm:$0xff]  ;;  %vm471_vm3 = vcmask 1040384   ;;  %vm473_vm5 = vcmask 254976  }
  0x15   : > { %577 = vmatpush3.msra.mxu0 %v228_v0  ;;  %s565_s14 = sshll.u32 %s219_s11, 4  ;;  %v320_v7 = vld [vmem:[%s868_s3] sm:$0xff]  ;;  %587 = vmatprep.subr.mxu1 %v321_v6  ;;  %s552_s11 = sshll.u32 %s215_s10, 1 }
  0x16   : > { %578 = vmatprep.subr.mxu0 %v227_v1  ;;  %s222_s17 = scalar_lea.vmem %s865_s0, %s565_s14  ;;  %588 = vmatpush3.msra.mxu1 %v321_v6  ;;  %v555_v8 = vld [vmem:[%s867_s2] ss:$0 sm:$0xff]  ;;  %s217_s13 = scalar_lea.vmem [#allocation2], %s552_s11 }
  0x17   : > { %579 = vmatpush3.msra.mxu0 %v227_v1  ;;  %v223_v4 = vld [vmem:[%s222_s17] sm:$0xff]  ;;  %v224_v5 = vld [vmem:[%s222_s17 + $0x8] sm:$0xff]  ;;  %589 = vmatprep.subr.mxu1 %v320_v7  ;;  %s489_s14 = sshll.u32 %s217_s13, 4  ;;  %s830_s17 = scalar_lea.hbm %s870_s5, %s562_s12  ;;  %s490_s14 = int_to_ptr.vmem [resolvable:$true] %s489_s14 }
  0x18   : > { %580 = vmatprep.subr.mxu0 %v226_v2  ;;  %584 = vmatprep.mubr.msk.f32.mxu0 %vm236_vm0, %v223_v4  ;;  %v558_v15 = vld [vmem:[%s869_s4] ss:$0 sm:$0xff]  ;;  %s645_s22 = scalar_lea.vmem %s490_s14, 32  ;;  %p652_p0 = scmp.lt.s32.totalorder %s490_s14, %s650_s26 }
  0x19   : > { %581 = vmatpush3.msra.mxu0 %v226_v2  ;;  %590 = vmatpush3.msra.mxu1 %v320_v7  ;;  %p646_p11 = scmp.ne.s32.totalorder %s490_s14, %s645_s22  ;;  %p653_p1 = scmp.lt.s32.totalorder %s651_s30, %s645_s22 }
  0x1a   : > { %582 = vmatprep.subr.mxu0 %v225_v3 }
  0x1b   : > { %583 = vmatpush3.msra.mxu0 %v225_v3  ;;  %p647_p12 = pnand %p646_p11, %p776_p5  ;;  %p654_p2 = por %p653_p1, %p652_p0 }
  0x1c   : > { %585 = vmatmul.mubr.msk.f32.vlgmr.msra.gmra.mxu0 %vm236_vm0, %v224_v5 }
  0x1d   : > { %p648_p13 = pneg %p647_p12 }
  0x1f   : > { %p655_p3 = pnand %p654_p2, %p648_p13 }
  0xdc   : > { %v586_v9 = vpop.f32.mrf.mxu0 }
  0xdd   : > { %v315_v10 = vadd.f32 %v586_v9, %v555_v8 }
  0xde   : > { %v309_v11 = vpop.f32.mrf.mxu0 }
  0xdf   : > { %v310_v12 = vadd.f32 %v555_v8, %v309_v11 }
  0xe1   : > { %633 = vtanh.f32 %v310_v12 }
  0xe2   : > { %635 = vtanh.f32 %v315_v10 }
  0xee   : > { %v634_v13 = vpop.eup %633 }
  0xef   : > { %v636_v14 = vpop.eup %635  ;;  %591 = vmatprep.mubr.msk.f32.mxu1 %vm329_vm1, %v634_v13 }
  0xf0   : > { %592 = vmatmul.mubr.msk.f32.vlgmr.msra.gmra.mxu1 %vm329_vm1, %v636_v14 }
 0x1b0   : > { %v593_v16 = vpop.f32.mrf.mxu1 }
 0x1b1   : > { %v408_v17 = vadd.f32 %v593_v16, %v558_v15 }
 0x1b2   : > { %v402_v18 = vpop.f32.mrf.mxu1 }
 0x1b3   : > { %v403_v19 = vadd.f32 %v558_v15, %v402_v18  ;;  %v412_v20 = vsel %vm236_vm0, %v408_v17, -inf }
 0x1b5   : > { %v411_v21 = vsel %vm236_vm0, %v403_v19, -inf }
 0x1b6   : > { %v413_v22 = vmax.f32 %v411_v21, %v412_v20 }
 0x1b8   : > { %v414_v23 = vrot.slane %v413_v22, 4 }
 0x1ba   : > { %v415_v24 = vmax.f32 %v413_v22, %v414_v23 }
 0x1bc   : > { %v416_v25 = vrot.slane %v415_v24, 2 }
 0x1be   : > { %v417_v26 = vmax.f32 %v415_v24, %v416_v25 }
 0x1c0   : > { %v418_v27 = vrot.slane %v417_v26, 1 }
 0x1c2   : > { %v419_v28 = vmax.f32 %v417_v26, %v418_v27 }
 0x1c4   : > { %v420_v29 = vsub.f32 %v403_v19, %v419_v28  ;;  %v421_v30 = vsub.f32 %v408_v17, %v419_v28 }
 0x1c6   : > { %v422_v31 = vmul.f32 1.442695, %v420_v29  ;;  %v424_v32 = vmul.f32 1.442695, %v421_v30 }
 0x1c8   : > { %637 = vpow2.f32 %v422_v31 }
 0x1c9   : > { %639 = vpow2.f32 %v424_v32 }
 0x1d5   : > { %v638_v33 = vpop.eup %637 }
 0x1d6   : > { %v640_v34 = vpop.eup %639  ;;  %v426_v35 = vsel %vm236_vm0, %v638_v33, 0.0  ;;  %v435_v36 = vmul.f32 %v638_v33, %v223_v4 }
 0x1d7   : > { %v427_v37 = vsel %vm236_vm0, %v640_v34, 0.0  ;;  %v436_v38 = vmul.f32 %v640_v34, %v224_v5 }
 0x1d8   : > { %v428_v39 = vadd.f32 %v427_v37, %v426_v35  ;;  %v446_v40 = vmul.f32 %v435_v36, %v223_v4  ;;  %v437_v41 = vsel %vm236_vm0, %v435_v36, 0.0 }
 0x1d9   : > { %v438_v42 = vsel %vm236_vm0, %v436_v38, 0.0  ;;  %v447_v43 = vmul.f32 %v436_v38, %v224_v5 }
 0x1da   : > { %v429_v44 = vrot.slane %v428_v39, 4  ;;  %v448_v45 = vsel %vm236_vm0, %v446_v40, 0.0  ;;  %v439_v46 = vadd.f32 %v438_v42, %v437_v41 }
 0x1db   : > { %v449_v47 = vsel %vm236_vm0, %v447_v43, 0.0 }
 0x1dc   : > { %v430_v48 = vadd.f32 %v429_v44, %v428_v39  ;;  %v450_v49 = vadd.f32 %v449_v47, %v448_v45  ;;  %v440_v51 = vrot.slane %v439_v46, 4 }
 0x1de   : > { %v431_v50 = vrot.slane %v430_v48, 2  ;;  %v451_v53 = vrot.slane %v450_v49, 4  ;;  %v441_v55 = vadd.f32 %v440_v51, %v439_v46 }
 0x1e0   : > { %v432_v52 = vadd.f32 %v431_v50, %v430_v48  ;;  %v452_v57 = vadd.f32 %v451_v53, %v450_v49  ;;  %v442_v58 = vrot.slane %v441_v55, 2 }
 0x1e2   : > { %v433_v54 = vrot.slane %v432_v52, 1  ;;  %v453_v59 = vrot.slane %v452_v57, 2  ;;  %v443_v60 = vadd.f32 %v442_v58, %v441_v55 }
 0x1e4   : > { %v434_v56 = vadd.f32 %v433_v54, %v432_v52  ;;  %v454_v61 = vadd.f32 %v453_v59, %v452_v57  ;;  %v444_v62 = vrot.slane %v443_v60, 1 }
 0x1e6   : > { %641 = vrcp.f32 %v434_v56  ;;  %v455_v63 = vrot.slane %v454_v61, 1  ;;  %v445_v0 = vadd.f32 %v444_v62, %v443_v60 }
 0x1e8   : > { %v456_v2 = vadd.f32 %v455_v63, %v454_v61 }
 0x1f3   : > { %v642_v1 = vpop.eup %641 }
 0x1f4   : > { %v459_v3 = vmul.f32 %v642_v1, %v445_v0  ;;  %v460_v4 = vmul.f32 %v642_v1, %v456_v2 }
 0x1f6   : > { %v461_v5 = vmul.f32 %v459_v3, %v459_v3 }
 0x1f8   : > { %v462_v6 = vsub.f32 %v460_v4, %v461_v5 }
 0x1fa   : > { %v463_v7 = vmax.f32 %v462_v6, 1e-09 }
 0x1fc   : > { %643 = vrsqrt.f32 %v463_v7  ;;  %vm466_vm2 = vcmp.eq.f32.partialorder %v463_v7, inf  ;;  %v469_v10 = vand.u32 2147483648, %v463_v7  ;;  %vm468_vm4 = vcmp.eq.f32.partialorder %v463_v7, 0.0 }
 0x209   : > { %v644_v8 = vpop.eup %643 }
 0x20a   : > { %v465_v9 = vmul.f32 %v644_v8, %v463_v7 }
 0x20c   : > { %v467_v11 = vsel %vm466_vm2, %v463_v7, %v465_v9 }
 0x20d   : > { %v470_v12 = vsel %vm468_vm4, %v469_v10, %v467_v11 }
 0x20e   : > { %v472_v13 = vsel %vm471_vm3, %v459_v3, %v470_v12 }
 0x20f   : > { %474 = vst.msk [vmem:[%s217_s13] sm:$0x3] %vm473_vm5, %v472_v13 }
 0x210   : > { %658 = shalt.err (!%p655_p3)
}
 0x211   : > { %s659_s6 = scalar_lea.hbm %s830_s17, 32  ;;  %s663_s9 = scalar_lea.hbm %s870_s5, 64 }
 0x212   : > { %p660_p4 = scmp.ne.s32.totalorder %s830_s17, %s659_s6  ;;  %p664_p9 = scmp.lt.s32.totalorder %s830_s17, %s870_s5 }
 0x213   : > { %p665_p10 = scmp.lt.s32.totalorder %s663_s9, %s659_s6 }
 0x214   : > { %p661_p7 = pnand %p660_p4, %p776_p5 }
 0x215   : > { %p666_p11 = por %p665_p10, %p664_p9 }
 0x216   : > { %p662_p8 = pneg %p661_p7 }
 0x218   : > { %p667_p12 = pnand %p666_p11, %p662_p8 }
 0x21a   : > { %670 = shalt.err (!%p667_p12)
}
 0x21b   : > { %594 = dma.vmem_to_hbm [thread:$0]  (%p776_p5), %s490_s14, 32, %s830_s17, %s476_s23  }
 0x21c PF: > { %p600_p13 = scmp.ge.s32.totalorder %s705_s21, 2  ;;  %s501_s12 = sand.u32 1, %s693_s18  }
 0x21d   : > { %s502_s13 = scalar_lea.sflag [#allocation3], %s501_s12 }
 0x21e   : > { %p597_p0 = pnand %p600_p13, %p780_p6 }
 0x220   : > { %p598_p1 = pneg %p597_p0 }
 0x222   : > { %688 = dma.done.wait (%p598_p1), %s502_s13, 32  }
 0x223   : > { %690 = vsyncadd (%p598_p1), %s502_s13, 4294967264  ;;  %p15_p2 = scmp.ge.s32.totalorder %s763_s24, 4   ;;  %s873_s18 = smov %s697_s19 }
 0x224   : > { %s874_s19 = smov %s701_s20  ;;  %s875_s20 = smov %s774_s27 }
 0x225   : > { %s876_s21 = smov %s763_s24  ;;  %17 = sbr.rel (!%p15_p2) target bundleno = 3 (0x3), region = 75 }
 0x22a   :  { %507 = vsyncpa [#allocation3], 1 }
 0x22b   :  { %509 = vsyncpa [#allocation3 + $0x1], 1 }

</bundles_post_ra>
